<compile_context>
chip_gen: v5e
topology: v5e:2x2
jax: 0.10.0
libtpu: 0.0.40
codegen_flags: <defaults>
</compile_context>

<pallas_src>
import jax
import jax.numpy as jnp
from jax.experimental import pallas as pl
from jax.experimental.pallas import tpu as pltpu


def _round_up(n, m):
    return ((n + m - 1) // m) * m


def _cdiv(a, b):
    return (a + b - 1) // b


# ----------------------------------------------------------------------------
# Pallas kernel: fused 5-layer MLP (Linear -> ReLU x4, then final Linear)
# ----------------------------------------------------------------------------
def lipschitz_fcnn_kernel(
    x_ref,
    w1_ref, b1_ref,
    w2_ref, b2_ref,
    w3_ref, b3_ref,
    w4_ref, b4_ref,
    w5_ref, b5_ref,
    o_ref,
):
    # In-kernel f32 -> bf16 cast of the raw input tile (no wrapper HBM pass).
    h = x_ref[...].astype(jnp.bfloat16)

    # bf16 operands on the MXU, f32 accumulation, f32 bias add + ReLU,
    # bf16 re-cast of the intermediate activations for the next matmul.
    h = jnp.dot(h, w1_ref[...], preferred_element_type=jnp.float32) + b1_ref[...]
    h = jnp.maximum(h, 0.0).astype(jnp.bfloat16)

    h = jnp.dot(h, w2_ref[...], preferred_element_type=jnp.float32) + b2_ref[...]
    h = jnp.maximum(h, 0.0).astype(jnp.bfloat16)

    h = jnp.dot(h, w3_ref[...], preferred_element_type=jnp.float32) + b3_ref[...]
    h = jnp.maximum(h, 0.0).astype(jnp.bfloat16)

    h = jnp.dot(h, w4_ref[...], preferred_element_type=jnp.float32) + b4_ref[...]
    h = jnp.maximum(h, 0.0).astype(jnp.bfloat16)

    y = jnp.dot(h, w5_ref[...], preferred_element_type=jnp.float32) + b5_ref[...]
    o_ref[...] = y.astype(o_ref.dtype)   # bf16 store (lane-dense, x128 padded)


# ----------------------------------------------------------------------------
# Wrapper: tile selection, weight prep, BlockSpecs / grid, final slice
# ----------------------------------------------------------------------------
def lipschitz_fcnn_forward(x, params, *, batch_tile=2048, keep_padded=False):
    """x: (N, input_dim) float32.
    params: list of 5 (W_t, b_row) pairs in f32, W_t shape (in, out),
    b_row shape (1, out).
    Returns (N, output_dim) f32, or the padded lane-dense (N, out_pad) bf16
    slab when keep_padded=True (lets the consumer fuse/skip the column slice).
    """
    N, input_dim = x.shape
    output_dim = params[-1][0].shape[1]
    out_pad = _round_up(output_dim, 128)          # lane-dense output block

    # Batch tiling: multiple of 16 (bf16 sublane packing).  Keep the grid at
    # >= 2 steps whenever possible so v7x's two TensorCores both get work.
    tile = _round_up(min(batch_tile, N), 16)
    if _cdiv(N, tile) < 2 and tile >= 32:
        tile = _round_up(_cdiv(N, 2), 16)
    grid_m = _cdiv(N, tile)                       # ragged edge handled by Pallas

    # Kernel-ready weights: W1 kept at K=input_dim (no x padding needed);
    # last layer zero-padded to out_pad columns.  Weights bf16, biases f32.
    kparams = []
    n_layers = len(params)
    for li, (w_t, b_row) in enumerate(params):
        w, b = w_t, b_row
        if li == n_layers - 1:
            w = jnp.pad(w, ((0, 0), (0, out_pad - w.shape[1])))
            b = jnp.pad(b, ((0, 0), (0, out_pad - b.shape[1])))
        kparams.append((w.astype(jnp.bfloat16), b.astype(jnp.float32)))

    flat_args = []
    # x block: last dim == full array dim (legal even though < 128); rows
    # are contiguous so the DMA is a single dense chunk per tile.
    in_specs = [pl.BlockSpec((tile, input_dim), lambda i: (i, 0))]
    flops = 0
    bytes_accessed = N * input_dim * 4 + N * out_pad * 2
    for (w, b) in kparams:
        flat_args += [w, b]
        # Constant index_map -> weights/biases loaded once, VMEM-resident.
        in_specs += [
            pl.BlockSpec(w.shape, lambda i: (0, 0)),
            pl.BlockSpec(b.shape, lambda i: (0, 0)),
        ]
        flops += 2 * N * w.shape[0] * w.shape[1]
        bytes_accessed += w.size * 2 + b.size * 4

    out_spec = pl.BlockSpec((tile, out_pad), lambda i: (i, 0))

    y_p = pl.pallas_call(
        lipschitz_fcnn_kernel,
        out_shape=jax.ShapeDtypeStruct((N, out_pad), jnp.bfloat16),
        grid=(grid_m,),
        in_specs=in_specs,
        out_specs=out_spec,
        compiler_params=pltpu.CompilerParams(
            dimension_semantics=("parallel",),      # megacore-shardable on v7x
            vmem_limit_bytes=32 * 1024 * 1024,      # safe on v5e/v6e/v7x
        ),
        cost_estimate=pl.CostEstimate(
            flops=int(flops),
            transcendentals=0,
            bytes_accessed=int(bytes_accessed),
        ),
    )(x, *flat_args)

    if keep_padded:
        return y_p                                  # (N, out_pad) bf16, lane-dense
    # Small column slice + f32 cast on the real (N, output_dim) columns only.
    return y_p[:, :output_dim].astype(jnp.float32)


# ----------------------------------------------------------------------------
# Glue: deterministic parameter init + spectral normalization (power iteration)
# ----------------------------------------------------------------------------
def spectral_normalize(w, n_iter=30, eps=1e-12):
    """w: (out_features, in_features). Returns w / sigma_max(w)."""
    out_f, in_f = w.shape
    u = jnp.full((out_f,), 1.0 / jnp.sqrt(out_f), dtype=w.dtype)
    v = jnp.zeros((in_f,), dtype=w.dtype)

    def body(_, carry):
        u, v = carry
        v = w.T @ u
        v = v / (jnp.linalg.norm(v) + eps)
        u = w @ v
        u = u / (jnp.linalg.norm(u) + eps)
        return (u, v)

    u, v = jax.lax.fori_loop(0, n_iter, body, (u, v))
    sigma = u @ (w @ v)
    return w / sigma


def init_params(key, input_dim, output_dim, n_hidden_layers=4, hidden_dim=128):
    """Builds the 5 spectral-normalized Linear layers of LipschitzFCNN (f32)."""
    dims = [input_dim] + [hidden_dim] * n_hidden_layers + [output_dim]
    params = []
    for li in range(len(dims) - 1):
        d_in, d_out = dims[li], dims[li + 1]
        key, kw, kb = jax.random.split(key, 3)
        bound = 1.0 / jnp.sqrt(d_in)
        w = jax.random.uniform(kw, (d_out, d_in), jnp.float32, -bound, bound)
        b = jax.random.uniform(kb, (d_out,), jnp.float32, -bound, bound)
        w_sn = spectral_normalize(w)                  # spectral-norm constraint
        params.append((w_sn.T, b.reshape(1, d_out)))  # transposed + row bias
    return params


# ----------------------------------------------------------------------------
# Pure-JAX references for correctness checks
# ----------------------------------------------------------------------------
def reference_forward_f32(x, params):
    h = x
    for li, (w_t, b_row) in enumerate(params):
        h = h @ w_t + b_row
        if li < len(params) - 1:
            h = jnp.maximum(h, 0.0)
    return h


def reference_forward_bf16(x, params):
    """Mirrors the kernel's precision: bf16 matmul operands, f32 accumulate,
    bf16 final store (then viewed in f32)."""
    h = x.astype(jnp.bfloat16)
    for li, (w_t, b_row) in enumerate(params):
        h = jnp.dot(h, w_t.astype(jnp.bfloat16),
                    preferred_element_type=jnp.float32) + b_row
        if li < len(params) - 1:
            h = jnp.maximum(h, 0.0).astype(jnp.bfloat16)
    return h.astype(jnp.bfloat16).astype(jnp.float32)


if __name__ == "__main__":
    key = jax.random.PRNGKey(0)

    # Small, forward-consistent shapes: MLP on (batch, input_dim) vectors.
    # batch is deliberately not a multiple of the tile to exercise the ragged
    # grid edge and the grid>=2 (megacore) clamp.
    batch, input_dim, hidden_dim, output_dim = 272, 16, 128, 8
    n_hidden_layers = 4

    key, kx = jax.random.split(key)
    x = jax.random.normal(kx, (batch, input_dim), dtype=jnp.float32)

    params = init_params(key, input_dim, output_dim,
                         n_hidden_layers=n_hidden_layers, hidden_dim=hidden_dim)

    # Default batch_tile (2048); the wrapper clamps the effective tile to
    # keep the grid at >= 2 steps for this small batch.
    out = lipschitz_fcnn_forward(x, params)
    out = jax.block_until_ready(out)
    assert out.shape == (batch, output_dim)

    # (a) tight check against a reference with matching precision
    #     (bf16 operands / f32 accumulate / bf16 output);
    # (b) loose sanity check against the full-f32 forward.
    ref_bf16 = reference_forward_bf16(x, params)
    assert jnp.allclose(out, ref_bf16, atol=5e-3, rtol=5e-3)

    ref_f32 = reference_forward_f32(x, params)
    assert jnp.allclose(out, ref_f32, atol=8e-2, rtol=8e-2)

    print("KERNEL_OK")
</pallas_src>

<mosaic_0001>
module attributes {stable_mosaic.version = 11 : i64} {
  func.func @lipschitz_fcnn_kernel(%arg0: i32, %arg1: memref<144x16xf32, #tpu.memory_space<vmem>>, %arg2: memref<16x128xbf16, #tpu.memory_space<vmem>>, %arg3: memref<1x128xf32, #tpu.memory_space<vmem>>, %arg4: memref<128x128xbf16, #tpu.memory_space<vmem>>, %arg5: memref<1x128xf32, #tpu.memory_space<vmem>>, %arg6: memref<128x128xbf16, #tpu.memory_space<vmem>>, %arg7: memref<1x128xf32, #tpu.memory_space<vmem>>, %arg8: memref<128x128xbf16, #tpu.memory_space<vmem>>, %arg9: memref<1x128xf32, #tpu.memory_space<vmem>>, %arg10: memref<128x128xbf16, #tpu.memory_space<vmem>>, %arg11: memref<1x128xf32, #tpu.memory_space<vmem>>, %arg12: memref<144x128xbf16, #tpu.memory_space<vmem>>) attributes {dimension_semantics = [#tpu.dimension_semantics<parallel>], iteration_bounds = array<i64: 2>, scalar_prefetch = 0 : i64, scratch_operands = 0 : i64, tpu.core_type = #tpu.core_type<tc>, window_params = [{transform_indices = @transform_0, window_bounds = array<i64: 144, 16>}, {pipeline_mode = #tpu.pipeline_mode<synchronous>, transform_indices = @transform_1, window_bounds = array<i64: 16, 128>}, {pipeline_mode = #tpu.pipeline_mode<synchronous>, transform_indices = @transform_2, window_bounds = array<i64: 1, 128>}, {pipeline_mode = #tpu.pipeline_mode<synchronous>, transform_indices = @transform_3, window_bounds = array<i64: 128, 128>}, {pipeline_mode = #tpu.pipeline_mode<synchronous>, transform_indices = @transform_4, window_bounds = array<i64: 1, 128>}, {pipeline_mode = #tpu.pipeline_mode<synchronous>, transform_indices = @transform_5, window_bounds = array<i64: 128, 128>}, {pipeline_mode = #tpu.pipeline_mode<synchronous>, transform_indices = @transform_6, window_bounds = array<i64: 1, 128>}, {pipeline_mode = #tpu.pipeline_mode<synchronous>, transform_indices = @transform_7, window_bounds = array<i64: 128, 128>}, {pipeline_mode = #tpu.pipeline_mode<synchronous>, transform_indices = @transform_8, window_bounds = array<i64: 1, 128>}, {pipeline_mode = #tpu.pipeline_mode<synchronous>, transform_indices = @transform_9, window_bounds = array<i64: 128, 128>}, {pipeline_mode = #tpu.pipeline_mode<synchronous>, transform_indices = @transform_10, window_bounds = array<i64: 1, 128>}, {transform_indices = @transform_11, window_bounds = array<i64: 144, 128>}]} {
    %c0 = arith.constant 0 : index
    %c0_0 = arith.constant 0 : index
    %0 = vector.load %arg1[%c0, %c0_0] : memref<144x16xf32, #tpu.memory_space<vmem>>, vector<144x16xf32>
    %1 = arith.truncf %0 : vector<144x16xf32> to vector<144x16xbf16>
    %c0_1 = arith.constant 0 : index
    %c0_2 = arith.constant 0 : index
    %2 = vector.load %arg2[%c0_1, %c0_2] : memref<16x128xbf16, #tpu.memory_space<vmem>>, vector<16x128xbf16>
    %cst = arith.constant dense<0.000000e+00> : vector<144x128xf32>
    %3 = tpu.matmul %1, %2, %cst {dimension_numbers = #tpu.dot_dimension_numbers<[1], [0], [0], [1], [0, 0, 1, 1], [], []>} : vector<144x16xbf16>, vector<16x128xbf16>, vector<144x128xf32> -> vector<144x128xf32>
    %c0_3 = arith.constant 0 : index
    %c0_4 = arith.constant 0 : index
    %4 = vector.load %arg3[%c0_3, %c0_4] : memref<1x128xf32, #tpu.memory_space<vmem>>, vector<1x128xf32>
    %5 = vector.broadcast %4 : vector<1x128xf32> to vector<144x128xf32>
    %6 = arith.addf %3, %5 : vector<144x128xf32>
    %cst_5 = arith.constant 0.000000e+00 : f32
    %7 = vector.broadcast %cst_5 : f32 to vector<144x128xf32>
    %8 = arith.maximumf %6, %7 : vector<144x128xf32>
    %9 = arith.truncf %8 : vector<144x128xf32> to vector<144x128xbf16>
    %c0_6 = arith.constant 0 : index
    %c0_7 = arith.constant 0 : index
    %10 = vector.load %arg4[%c0_6, %c0_7] : memref<128x128xbf16, #tpu.memory_space<vmem>>, vector<128x128xbf16>
    %cst_8 = arith.constant dense<0.000000e+00> : vector<144x128xf32>
    %11 = tpu.matmul %9, %10, %cst_8 {dimension_numbers = #tpu.dot_dimension_numbers<[1], [0], [0], [1], [0, 0, 1, 1], [], []>} : vector<144x128xbf16>, vector<128x128xbf16>, vector<144x128xf32> -> vector<144x128xf32>
    %c0_9 = arith.constant 0 : index
    %c0_10 = arith.constant 0 : index
    %12 = vector.load %arg5[%c0_9, %c0_10] : memref<1x128xf32, #tpu.memory_space<vmem>>, vector<1x128xf32>
    %13 = vector.broadcast %12 : vector<1x128xf32> to vector<144x128xf32>
    %14 = arith.addf %11, %13 : vector<144x128xf32>
    %cst_11 = arith.constant 0.000000e+00 : f32
    %15 = vector.broadcast %cst_11 : f32 to vector<144x128xf32>
    %16 = arith.maximumf %14, %15 : vector<144x128xf32>
    %17 = arith.truncf %16 : vector<144x128xf32> to vector<144x128xbf16>
    %c0_12 = arith.constant 0 : index
    %c0_13 = arith.constant 0 : index
    %18 = vector.load %arg6[%c0_12, %c0_13] : memref<128x128xbf16, #tpu.memory_space<vmem>>, vector<128x128xbf16>
    %cst_14 = arith.constant dense<0.000000e+00> : vector<144x128xf32>
    %19 = tpu.matmul %17, %18, %cst_14 {dimension_numbers = #tpu.dot_dimension_numbers<[1], [0], [0], [1], [0, 0, 1, 1], [], []>} : vector<144x128xbf16>, vector<128x128xbf16>, vector<144x128xf32> -> vector<144x128xf32>
    %c0_15 = arith.constant 0 : index
    %c0_16 = arith.constant 0 : index
    %20 = vector.load %arg7[%c0_15, %c0_16] : memref<1x128xf32, #tpu.memory_space<vmem>>, vector<1x128xf32>
    %21 = vector.broadcast %20 : vector<1x128xf32> to vector<144x128xf32>
    %22 = arith.addf %19, %21 : vector<144x128xf32>
    %cst_17 = arith.constant 0.000000e+00 : f32
    %23 = vector.broadcast %cst_17 : f32 to vector<144x128xf32>
    %24 = arith.maximumf %22, %23 : vector<144x128xf32>
    %25 = arith.truncf %24 : vector<144x128xf32> to vector<144x128xbf16>
    %c0_18 = arith.constant 0 : index
    %c0_19 = arith.constant 0 : index
    %26 = vector.load %arg8[%c0_18, %c0_19] : memref<128x128xbf16, #tpu.memory_space<vmem>>, vector<128x128xbf16>
    %cst_20 = arith.constant dense<0.000000e+00> : vector<144x128xf32>
    %27 = tpu.matmul %25, %26, %cst_20 {dimension_numbers = #tpu.dot_dimension_numbers<[1], [0], [0], [1], [0, 0, 1, 1], [], []>} : vector<144x128xbf16>, vector<128x128xbf16>, vector<144x128xf32> -> vector<144x128xf32>
    %c0_21 = arith.constant 0 : index
    %c0_22 = arith.constant 0 : index
    %28 = vector.load %arg9[%c0_21, %c0_22] : memref<1x128xf32, #tpu.memory_space<vmem>>, vector<1x128xf32>
    %29 = vector.broadcast %28 : vector<1x128xf32> to vector<144x128xf32>
    %30 = arith.addf %27, %29 : vector<144x128xf32>
    %cst_23 = arith.constant 0.000000e+00 : f32
    %31 = vector.broadcast %cst_23 : f32 to vector<144x128xf32>
    %32 = arith.maximumf %30, %31 : vector<144x128xf32>
    %33 = arith.truncf %32 : vector<144x128xf32> to vector<144x128xbf16>
    %c0_24 = arith.constant 0 : index
    %c0_25 = arith.constant 0 : index
    %34 = vector.load %arg10[%c0_24, %c0_25] : memref<128x128xbf16, #tpu.memory_space<vmem>>, vector<128x128xbf16>
    %cst_26 = arith.constant dense<0.000000e+00> : vector<144x128xf32>
    %35 = tpu.matmul %33, %34, %cst_26 {dimension_numbers = #tpu.dot_dimension_numbers<[1], [0], [0], [1], [0, 0, 1, 1], [], []>} : vector<144x128xbf16>, vector<128x128xbf16>, vector<144x128xf32> -> vector<144x128xf32>
    %c0_27 = arith.constant 0 : index
    %c0_28 = arith.constant 0 : index
    %36 = vector.load %arg11[%c0_27, %c0_28] : memref<1x128xf32, #tpu.memory_space<vmem>>, vector<1x128xf32>
    %37 = vector.broadcast %36 : vector<1x128xf32> to vector<144x128xf32>
    %38 = arith.addf %35, %37 : vector<144x128xf32>
    %39 = arith.truncf %38 : vector<144x128xf32> to vector<144x128xbf16>
    %c0_29 = arith.constant 0 : index
    %c0_30 = arith.constant 0 : index
    %40 = vector.load %arg12[%c0_29, %c0_30] : memref<144x128xbf16, #tpu.memory_space<vmem>>, vector<144x128xbf16>
    tpu.vector_store %arg12[%c0_29, %c0_30], %39 {strides = array<i32>} : memref<144x128xbf16, #tpu.memory_space<vmem>>, vector<144x128xbf16>,
    return
  }
  func.func @transform_0(%arg0: i32) -> (i32, i32) {
    %c0_i32 = arith.constant 0 : i32
    %c0_i32_0 = arith.constant 0 : i32
    return %arg0, %c0_i32 : i32, i32
  }
  func.func @transform_1(%arg0: i32) -> (i32, i32) {
    %c0_i32 = arith.constant 0 : i32
    %c0_i32_0 = arith.constant 0 : i32
    %c0_i32_1 = arith.constant 0 : i32
    return %c0_i32, %c0_i32_0 : i32, i32
  }
  func.func @transform_2(%arg0: i32) -> (i32, i32) {
    %c0_i32 = arith.constant 0 : i32
    %c0_i32_0 = arith.constant 0 : i32
    %c0_i32_1 = arith.constant 0 : i32
    return %c0_i32, %c0_i32_0 : i32, i32
  }
  func.func @transform_3(%arg0: i32) -> (i32, i32) {
    %c0_i32 = arith.constant 0 : i32
    %c0_i32_0 = arith.constant 0 : i32
    %c0_i32_1 = arith.constant 0 : i32
    return %c0_i32, %c0_i32_0 : i32, i32
  }
  func.func @transform_4(%arg0: i32) -> (i32, i32) {
    %c0_i32 = arith.constant 0 : i32
    %c0_i32_0 = arith.constant 0 : i32
    %c0_i32_1 = arith.constant 0 : i32
    return %c0_i32, %c0_i32_0 : i32, i32
  }
  func.func @transform_5(%arg0: i32) -> (i32, i32) {
    %c0_i32 = arith.constant 0 : i32
    %c0_i32_0 = arith.constant 0 : i32
    %c0_i32_1 = arith.constant 0 : i32
    return %c0_i32, %c0_i32_0 : i32, i32
  }
  func.func @transform_6(%arg0: i32) -> (i32, i32) {
    %c0_i32 = arith.constant 0 : i32
    %c0_i32_0 = arith.constant 0 : i32
    %c0_i32_1 = arith.constant 0 : i32
    return %c0_i32, %c0_i32_0 : i32, i32
  }
  func.func @transform_7(%arg0: i32) -> (i32, i32) {
    %c0_i32 = arith.constant 0 : i32
    %c0_i32_0 = arith.constant 0 : i32
    %c0_i32_1 = arith.constant 0 : i32
    return %c0_i32, %c0_i32_0 : i32, i32
  }
  func.func @transform_8(%arg0: i32) -> (i32, i32) {
    %c0_i32 = arith.constant 0 : i32
    %c0_i32_0 = arith.constant 0 : i32
    %c0_i32_1 = arith.constant 0 : i32
    return %c0_i32, %c0_i32_0 : i32, i32
  }
  func.func @transform_9(%arg0: i32) -> (i32, i32) {
    %c0_i32 = arith.constant 0 : i32
    %c0_i32_0 = arith.constant 0 : i32
    %c0_i32_1 = arith.constant 0 : i32
    return %c0_i32, %c0_i32_0 : i32, i32
  }
  func.func @transform_10(%arg0: i32) -> (i32, i32) {
    %c0_i32 = arith.constant 0 : i32
    %c0_i32_0 = arith.constant 0 : i32
    %c0_i32_1 = arith.constant 0 : i32
    return %c0_i32, %c0_i32_0 : i32, i32
  }
  func.func @transform_11(%arg0: i32) -> (i32, i32) {
    %c0_i32 = arith.constant 0 : i32
    %c0_i32_0 = arith.constant 0 : i32
    return %arg0, %c0_i32 : i32, i32
  }
}

</mosaic_0001>

<bundles_post_ra>
// kernel: tpu_custom_call.1
= control target key start
LH: loop header
LB: loop body
LE: loop exit
PB: predicated region body
PF: predicated region fallthrough
CT: control target
= control target key end

     0   :  { %s2034_s0 = inlined_call_operand.vmem [shape: f32[272,16], index: 0, kind: input, shape index: {}]   ;;  %s2035_s1 = inlined_call_operand.vmem [shape: bf16[16,128], index: 1, kind: input, shape index: {}]   ;;  %s2036_s2 = inlined_call_operand.vmem [shape: f32[1,128], index: 2, kind: input, shape index: {}]   ;;  %s2037_s3 = inlined_call_operand.vmem [shape: bf16[128,128], index: 3, kind: input, shape index: {}]   ;;  %s2038_s4 = inlined_call_operand.vmem [shape: f32[1,128], index: 4, kind: input, shape index: {}]   ;;  %s2039_s5 = inlined_call_operand.vmem [shape: bf16[128,128], index: 5, kind: input, shape index: {}]   ;;  %s2040_s6 = inlined_call_operand.vmem [shape: f32[1,128], index: 6, kind: input, shape index: {}]   ;;  %s2041_s7 = inlined_call_operand.vmem [shape: bf16[128,128], index: 7, kind: input, shape index: {}]   ;;  %s2042_s8 = inlined_call_operand.vmem [shape: f32[1,128], index: 8, kind: input, shape index: {}]   ;;  %s2043_s9 = inlined_call_operand.vmem [shape: bf16[128,128], index: 9, kind: input, shape index: {}]   ;;  %s2044_s10 = inlined_call_operand.vmem [shape: f32[1,128], index: 10, kind: input, shape index: {}]   ;;  %s2045_s11 = inlined_call_operand.hbm [shape: bf16[272,128], index: 11, kind: output, shape index: {}]  }
   0x1   :  { %2047 = sst [smem:[#allocation5_spill]] %s2034_s0 }
   0x2   :  { %2048 = sst [smem:[#allocation6_spill]] %s2035_s1 }
   0x3   :  { %2049 = sst [smem:[#allocation7_spill]] %s2036_s2 }
   0x4   :  { %2050 = sst [smem:[#allocation8_spill]] %s2037_s3 }
   0x5   :  { %16 = vsyncpa [#allocation3], 0 }
   0x6   :  { %18 = vsyncpa [#allocation3 + $0x1], 0  ;;  %s1678_s17 = smov 0   ;;  %s1680_s18 = smov 0  }
   0x7   :  { %s1682_s19 = smov 0   ;;  %s1684_s20 = smov 0  }
   0x8 LB: > { %s1699_s21 = sadd.s32 4294967295, %s1613_s20   ;;  %s1251_s22 = sadd.s32 4294967294, %s1613_s20   ;;  %s1613_s20 = sphi %s1684_s20, %s2062_s20   ;;  %s1609_s19 = sphi %s1682_s19, %s2061_s19   ;;  %s1605_s18 = sphi %s1680_s18, %s2060_s18   ;;  %s1601_s17 = sphi %s1678_s17, %s2059_s17  }
   0x9   : > { %s1703_s23 = sadd.s32 1, %s1613_s20   ;;  %s267_s24 = sadd.s32 1, %s1609_s19 }
   0xa   : > { %s264_s25 = ssub.s32 %s1613_s20, %s1703_s23  ;;  %p277_p0 = scmp.ne.s32.totalorder %s1609_s19, %s1605_s18 }
   0xb   : > { %p265_p1 = scmp.eq.s32.totalorder %s264_s25, 0  ;;  %p278_p2 = scmp.eq.s32.totalorder %s1699_s21, 1 }
   0xc   : > { %p283_p3 = scmp.ne.s32.totalorder %s1605_s18, %s1601_s17  ;;  %p284_p4 = scmp.eq.s32.totalorder %s1251_s22, 1 }
   0xd   : > { %s1714_s26 = scalar_select %p265_p1, %s1609_s19, %s267_s24  }
   0xe   : > { %p1716_p5 = por %p278_p2, %p277_p0  ;;  %p1720_p6 = por %p284_p4, %p283_p3 }
   0xf   : > { %p1254_p7 = scmp.ge.s32.totalorder %s1613_s20, 1  ;;  %p349_p8 = scmp.lt.s32.totalorder %s1613_s20, 3 }
  0x11   : > { %p350_p9 = pnand %p1254_p7, %p349_p8 }
  0x12   : > { %s2053_s1 = sld [smem:[#allocation6_spill]] (!%p350_p9)  ;;  %s1730_s12 = smul.u32 (!%p350_p9), 18, %s1699_s21 }
  0x13   : > { %353 = sbr.rel (%p350_p9) target bundleno = 902 (0x386), region = 64  ;;  %s2054_s0 = sld [smem:[#allocation5_spill]] (!%p350_p9) }
  0x14   : > { %p398_p10 = scmp.lt.s32.totalorder (!%p350_p9), %s1730_s12, 33  ;;  %s2055_s3 = sld [smem:[#allocation8_spill]] (!%p350_p9) }
  0x15   : > { %s2056_s2 = sld [smem:[#allocation7_spill]] (!%p350_p9)  ;;  %s390_s25 = sand.u32 (!%p350_p9), 1, %s1605_s18  }
  0x16   : > { %s1973_s15 = scalar_lea.sflag (!%p350_p9), [#allocation3], %s390_s25 }
  0x18   : > { %v1404_v0 = vld [vmem:[%s2053_s1] sm:$0xff]  ;;  %s399_s13 = scalar_select %p398_p10, %s1730_s12, 33  ;;  %vm452_vm0 = vcmask 130048  }
  0x19   : > { %487 = vmatpush.bf16.msra.mxu0 %v1404_v0  ;;  %1491 = vmatpush.bf16.msra.mxu1 %v1404_v0  ;;  %s1175_s16 = ssub.s32 (%p1716_p5), 34, %s1730_s12 }
  0x1a   : > { %1492 = vmatpush.bf16.msra.mxu2 %v1404_v0  ;;  %1493 = vmatpush.bf16.msra.mxu3 %v1404_v0  ;;  %s1255_s14 = sshll.u32 %s399_s13, 3  ;;  %v1412_v12 = vld [vmem:[%s2055_s3 + $0x38] sm:$0xff]  ;;  %v1411_v14 = vld [vmem:[%s2055_s3 + $0x30] sm:$0xff]  ;;  %v1410_v17 = vld [vmem:[%s2055_s3 + $0x28] sm:$0xff]  ;;  %s1494_s13 = smul.u32 72, %s390_s25 }
  0x1b   : > { %s1737_s22 = scalar_lea.vmem %s2054_s0, %s1255_s14  ;;  %v1409_v24 = vld [vmem:[%s2055_s3 + $0x20] sm:$0xff]  ;;  %v1408_v29 = vld [vmem:[%s2055_s3 + $0x18] sm:$0xff]  ;;  %v1407_v33 = vld [vmem:[%s2055_s3 + $0x10] sm:$0xff]  ;;  %p1176_p11 = scmp.lt.s32.totalorder (%p1716_p5), %s1175_s16, 18 }
  0x1c   : > { %v413_v1 = vld [vmem:[%s1737_s22] sm:$0xff]  ;;  %v414_v2 = vld [vmem:[%s1737_s22 + $0x8] sm:$0xff]  ;;  %v427_v10 = vld [vmem:[%s1737_s22 + $0x70] sm:$0xff]  ;;  %s1960_s14 = scalar_lea.vmem [#allocation2], %s1494_s13 }
  0x1d   : > { %v431_v3 = vpack.c.bf16 %v414_v2, %v413_v1  ;;  %v417_v4 = vld [vmem:[%s1737_s22 + $0x20] sm:$0xff]  ;;  %v418_v5 = vld [vmem:[%s1737_s22 + $0x28] sm:$0xff]  ;;  %v428_v11 = vld [vmem:[%s1737_s22 + $0x78] sm:$0xff]  ;;  %629 = vmatpush.bf16.msrb.mxu1 %v1412_v12 }
  0x1e   : > { %v433_v6 = vpack.c.bf16 %v418_v5, %v417_v4  ;;  %v421_v7 = vld [vmem:[%s1737_s22 + $0x40] sm:$0xff]  ;;  %v422_v8 = vld [vmem:[%s1737_s22 + $0x48] sm:$0xff]  ;;  %v438_v13 = vpack.c.bf16 %v428_v11, %v427_v10  ;;  %v415_v15 = vld [vmem:[%s1737_s22 + $0x10] sm:$0xff] }
  0x1f   : > { %1260 = vmatmul.msk.bf16.vlgmr.msra.gmra.mxu0 %vm452_vm0, %v431_v3  ;;  %v435_v9 = vpack.c.bf16 %v422_v8, %v421_v7  ;;  %v416_v16 = vld [vmem:[%s1737_s22 + $0x18] sm:$0xff]  ;;  %v419_v18 = vld [vmem:[%s1737_s22 + $0x30] sm:$0xff]  ;;  %v429_v26 = vld [vmem:[%s1737_s22 + $0x80] sm:$0xff] }
  0x20   : > { %1262 = vmatmul.msk.bf16.vlgmr.msra.gmra.mxu1 %vm452_vm0, %v433_v6  ;;  %1267 = vmatmul.msk.bf16.vlgmr.msra.gmra.mxu3 %vm452_vm0, %v438_v13  ;;  %v420_v19 = vld [vmem:[%s1737_s22 + $0x38] sm:$0xff]  ;;  %v432_v20 = vpack.c.bf16 %v416_v16, %v415_v15  ;;  %v423_v21 = vld [vmem:[%s1737_s22 + $0x50] sm:$0xff]  ;;  %v430_v27 = vld [vmem:[%s1737_s22 + $0x88] sm:$0xff] }
  0x21   : > { %1264 = vmatmul.msk.bf16.vlgmr.msra.gmra.mxu2 %vm452_vm0, %v435_v9  ;;  %630 = vmatpush.bf16.msrb.mxu1 %v1411_v14  ;;  %v424_v22 = vld [vmem:[%s1737_s22 + $0x58] sm:$0xff]  ;;  %v434_v23 = vpack.c.bf16 %v420_v19, %v419_v18  ;;  %v439_v28 = vpack.c.bf16 %v430_v27, %v429_v26  ;;  %v425_v30 = vld [vmem:[%s1737_s22 + $0x60] sm:$0xff]  ;;  %v426_v31 = vld [vmem:[%s1737_s22 + $0x68] sm:$0xff] }
  0x22   : > { %v436_v25 = vpack.c.bf16 %v424_v22, %v423_v21  ;;  %v437_v32 = vpack.c.bf16 %v426_v31, %v425_v30  ;;  %v1406_v34 = vld [vmem:[%s2055_s3 + $0x8] sm:$0xff]  ;;  %v1405_v35 = vld [vmem:[%s2055_s3] sm:$0xff]  ;;  %v1420_v3 = vld [vmem:[%s2039_s5 + $0x38] sm:$0xff] }
  0x23   : > { %v1793_v37 = vld [vmem:[%s2056_s2] ss:$0 sm:$0xff]  ;;  %778 = vmatpush.bf16.msrb.mxu2 %v1420_v3  ;;  %v1419_v11 = vld [vmem:[%s2039_s5 + $0x30] sm:$0xff]  ;;  %v1418_v12 = vld [vmem:[%s2039_s5 + $0x28] sm:$0xff] }
  0x24   : > { %v1417_v15 = vld [vmem:[%s2039_s5 + $0x20] sm:$0xff]  ;;  %v1415_v21 = vld [vmem:[%s2039_s5 + $0x10] sm:$0xff]  ;;  %v1414_v30 = vld [vmem:[%s2039_s5 + $0x8] sm:$0xff] }
  0x25   : > { %631 = vmatpush.bf16.msrb.mxu1 %v1410_v17 }
  0x27   : > { %779 = vmatpush.bf16.msrb.mxu2 %v1419_v11 }
  0x29   : > { %632 = vmatpush.bf16.msrb.mxu1 %v1409_v24 }
  0x2b   : > { %780 = vmatpush.bf16.msrb.mxu2 %v1418_v12 }
  0x2d   : > { %633 = vmatpush.bf16.msrb.mxu1 %v1408_v29 }
  0x2f   : > { %1261 = vmatmul.msk.bf16.gmra.mxu0 %vm452_vm0, %v432_v20  ;;  %781 = vmatpush.bf16.msrb.mxu2 %v1417_v15  ;;  %v1416_v20 = vld [vmem:[%s2039_s5 + $0x18] sm:$0xff] }
  0x30   : > { %1263 = vmatmul.msk.bf16.gmra.mxu1 %vm452_vm0, %v434_v23  ;;  %1268 = vmatmul.msk.bf16.gmra.mxu3 %vm452_vm0, %v439_v28 }
  0x31   : > { %1265 = vmatmul.msk.bf16.gmra.mxu2 %vm452_vm0, %v436_v25  ;;  %634 = vmatpush.bf16.msrb.mxu1 %v1407_v33  ;;  %v1413_v33 = vld [vmem:[%s2039_s5] sm:$0xff] }
  0x33   : > { %782 = vmatpush.bf16.msrb.mxu2 %v1416_v20 }
  0x35   : > { %635 = vmatpush.bf16.msrb.mxu1 %v1406_v34 }
  0x37   : > { %783 = vmatpush.bf16.msrb.mxu2 %v1415_v21 }
  0x39   : > { %636 = vmatpush.bf16.msrb.mxu1 %v1405_v35 }
  0x3b   : > { %784 = vmatpush.bf16.msrb.mxu2 %v1414_v30 }
  0x3f   : > { %785 = vmatpush.bf16.msrb.mxu2 %v1413_v33 }
  0x41   : > { %1266 = vmatmul.msk.bf16.gmra.mxu2 %vm452_vm0, %v437_v32 }
  0x9c   : > { %v489_v36 = vpop.f32.mrf.mxu0 }
  0x9d   : > { %v490_v38 = vadd.f32 %v1793_v37, %v489_v36  ;;  %v499_v45 = vpop.f32.mrf.mxu1 }
  0x9e   : > { %v500_v53 = vadd.f32 %v1793_v37, %v499_v45 }
  0x9f   : > { %v534_v41 = vmax.f32 %v490_v38, 0.0 }
  0xa0   : > { %v538_v56 = vmax.f32 %v500_v53, 0.0 }
  0xa3   : > { %v524_v23 = vpop.f32.mrf.mxu3 }
  0xa4   : > { %v491_v39 = vpop.f32.mrf.mxu0  ;;  %v509_v59 = vpop.f32.mrf.mxu2  ;;  %v525_v31 = vadd.f32 %v1793_v37, %v524_v23 }
  0xa5   : > { %v492_v40 = vadd.f32 %v1793_v37, %v491_v39  ;;  %v501_v52 = vpop.f32.mrf.mxu1  ;;  %v510_v5 = vadd.f32 %v1793_v37, %v509_v59 }
  0xa6   : > { %v502_v54 = vadd.f32 %v1793_v37, %v501_v52  ;;  %v548_v35 = vmax.f32 %v525_v31, 0.0 }
  0xa7   : > { %v535_v42 = vmax.f32 %v492_v40, 0.0  ;;  %v542_v7 = vmax.f32 %v510_v5, 0.0 }
  0xa8   : > { %v539_v57 = vmax.f32 %v502_v54, 0.0 }
  0xa9   : > { %v552_v43 = vpack.c.bf16 %v535_v42, %v534_v41 }
  0xaa   : > { %v554_v58 = vpack.c.bf16 %v539_v57, %v538_v56 }
  0xab   : > { %637 = vmatmul.bf16.vlgmr.msrb.gmra.mxu1 %v552_v43  ;;  %v526_v29 = vpop.f32.mrf.mxu3 }
  0xac   : > { %v494_v44 = vpop.f32.mrf.mxu0  ;;  %v511_v1 = vpop.f32.mrf.mxu2  ;;  %v527_v32 = vadd.f32 %v1793_v37, %v526_v29 }
  0xad   : > { %v495_v46 = vadd.f32 %v1793_v37, %v494_v44  ;;  %v504_v55 = vpop.f32.mrf.mxu1  ;;  %v512_v6 = vadd.f32 %v1793_v37, %v511_v1 }
  0xae   : > { %v505_v61 = vadd.f32 %v1793_v37, %v504_v55  ;;  %v549_v36 = vmax.f32 %v527_v32, 0.0  ;;  %v1425_v32 = vld [vmem:[%s2041_s7 + $0x20] sm:$0xff] }
  0xaf   : > { %v536_v49 = vmax.f32 %v495_v46, 0.0  ;;  %v543_v8 = vmax.f32 %v512_v6, 0.0  ;;  %v1840_v46 = vld [vmem:[%s2038_s4] ss:$0 sm:$0xff] }
  0xb0   : > { %v540_v63 = vmax.f32 %v505_v61, 0.0  ;;  %v559_v38 = vpack.c.bf16 %v549_v36, %v548_v35  ;;  %v1423_v36 = vld [vmem:[%s2041_s7 + $0x10] sm:$0xff] }
  0xb1   : > { %v556_v9 = vpack.c.bf16 %v543_v8, %v542_v7 }
  0xb3   : > { %v529_v34 = vpop.f32.mrf.mxu3 }
  0xb4   : > { %v496_v47 = vpop.f32.mrf.mxu0  ;;  %v514_v4 = vpop.f32.mrf.mxu2  ;;  %v530_v40 = vadd.f32 %v1793_v37, %v529_v34  ;;  %v1424_v34 = vld [vmem:[%s2041_s7 + $0x18] sm:$0xff] }
  0xb5   : > { %v497_v48 = vadd.f32 %v1793_v37, %v496_v47  ;;  %v506_v60 = vpop.f32.mrf.mxu1  ;;  %v515_v13 = vadd.f32 %v1793_v37, %v514_v4 }
  0xb6   : > { %v507_v62 = vadd.f32 %v1793_v37, %v506_v60  ;;  %v550_v42 = vmax.f32 %v530_v40, 0.0 }
  0xb7   : > { %v537_v50 = vmax.f32 %v497_v48, 0.0  ;;  %v544_v17 = vmax.f32 %v515_v13, 0.0 }
  0xb8   : > { %v541_v0 = vmax.f32 %v507_v62, 0.0 }
  0xb9   : > { %v553_v51 = vpack.c.bf16 %v537_v50, %v536_v49 }
  0xba   : > { %v555_v2 = vpack.c.bf16 %v541_v0, %v540_v63 }
  0xbb   : > { %642 = vmatmul.bf16.gmra.mxu1 %v553_v51  ;;  %v531_v39 = vpop.f32.mrf.mxu3 }
  0xbc   : > { %v516_v10 = vpop.f32.mrf.mxu2  ;;  %v532_v41 = vadd.f32 %v1793_v37, %v531_v39 }
  0xbd   : > { %v517_v14 = vadd.f32 %v1793_v37, %v516_v10 }
  0xbe   : > { %v551_v43 = vmax.f32 %v532_v41, 0.0 }
  0xbf   : > { %v545_v18 = vmax.f32 %v517_v14, 0.0 }
  0xc0   : > { %v560_v45 = vpack.c.bf16 %v551_v43, %v550_v42 }
  0xc1   : > { %v557_v19 = vpack.c.bf16 %v545_v18, %v544_v17 }
  0xc4   : > { %v519_v16 = vpop.f32.mrf.mxu2 }
  0xc5   : > { %v520_v24 = vadd.f32 %v1793_v37, %v519_v16 }
  0xc7   : > { %v546_v26 = vmax.f32 %v520_v24, 0.0  ;;  %v1428_v24 = vld [vmem:[%s2041_s7 + $0x38] sm:$0xff] }
  0xc8   : > { %927 = vmatpush.bf16.msrb.mxu3 %v1428_v24 }
  0xcb   : > { %647 = vmatmul.bf16.gmra.mxu1 %v554_v58 }
  0xcc   : > { %v521_v22 = vpop.f32.mrf.mxu2 }
  0xcd   : > { %v522_v25 = vadd.f32 %v1793_v37, %v521_v22 }
  0xcf   : > { %v547_v27 = vmax.f32 %v522_v25, 0.0  ;;  %v1427_v25 = vld [vmem:[%s2041_s7 + $0x30] sm:$0xff] }
  0xd0   : > { %928 = vmatpush.bf16.msrb.mxu3 %v1427_v25 }
  0xd1   : > { %v558_v28 = vpack.c.bf16 %v547_v27, %v546_v26 }
  0xdb   : > { %652 = vmatmul.bf16.gmra.mxu1 %v555_v2 }
  0xeb   : > { %657 = vmatmul.bf16.gmra.mxu1 %v556_v9 }
  0xfb   : > { %662 = vmatmul.bf16.gmra.mxu1 %v557_v19 }
 0x10b   : > { %667 = vmatmul.bf16.gmra.mxu1 %v558_v28  ;;  %v1426_v28 = vld [vmem:[%s2041_s7 + $0x28] sm:$0xff] }
 0x10c   : > { %929 = vmatpush.bf16.msrb.mxu3 %v1426_v28 }
 0x110   : > { %930 = vmatpush.bf16.msrb.mxu3 %v1425_v32  ;;  %v1436_v32 = vld [vmem:[%s2043_s9 + $0x38] sm:$0xff] }
 0x111   : > { %1076 = vmatpush.bf16.msrb.mxu0 %v1436_v32 }
 0x114   : > { %931 = vmatpush.bf16.msrb.mxu3 %v1424_v34 }
 0x118   : > { %932 = vmatpush.bf16.msrb.mxu3 %v1423_v36  ;;  %v1434_v36 = vld [vmem:[%s2043_s9 + $0x28] sm:$0xff] }
 0x11b   : > { %672 = vmatmul.bf16.gmra.mxu1 %v559_v38  ;;  %v1422_v38 = vld [vmem:[%s2041_s7 + $0x8] sm:$0xff] }
 0x11c   : > { %933 = vmatpush.bf16.msrb.mxu3 %v1422_v38 }
 0x128   : > { %v638_v44 = vpop.f32.mrf.mxu1 }
 0x129   : > { %v639_v47 = vadd.f32 %v1840_v46, %v638_v44  ;;  %v1421_v44 = vld [vmem:[%s2041_s7] sm:$0xff] }
 0x12a   : > { %934 = vmatpush.bf16.msrb.mxu3 %v1421_v44 }
 0x12b   : > { %677 = vmatmul.bf16.gmra.mxu1 %v560_v45  ;;  %v683_v50 = vmax.f32 %v639_v47, 0.0 }
 0x130   : > { %v640_v48 = vpop.f32.mrf.mxu1 }
 0x131   : > { %v641_v49 = vadd.f32 %v1840_v46, %v640_v48 }
 0x133   : > { %v684_v51 = vmax.f32 %v641_v49, 0.0 }
 0x135   : > { %v701_v52 = vpack.c.bf16 %v684_v51, %v683_v50 }
 0x137   : > { %786 = vmatmul.bf16.vlgmr.msrb.gmra.mxu2 %v701_v52 }
 0x138   : > { %v643_v37 = vpop.f32.mrf.mxu1 }
 0x139   : > { %v644_v53 = vadd.f32 %v1840_v46, %v643_v37 }
 0x13b   : > { %v685_v56 = vmax.f32 %v644_v53, 0.0 }
 0x140   : > { %v645_v54 = vpop.f32.mrf.mxu1 }
 0x141   : > { %v646_v55 = vadd.f32 %v1840_v46, %v645_v54  ;;  %v1887_v54 = vld [vmem:[%s2040_s6] ss:$0 sm:$0xff] }
 0x143   : > { %v686_v57 = vmax.f32 %v646_v55, 0.0 }
 0x145   : > { %v702_v58 = vpack.c.bf16 %v686_v57, %v685_v56 }
 0x147   : > { %791 = vmatmul.bf16.gmra.mxu2 %v702_v58 }
 0x148   : > { %v648_v59 = vpop.f32.mrf.mxu1 }
 0x149   : > { %v649_v60 = vadd.f32 %v1840_v46, %v648_v59 }
 0x14b   : > { %v687_v63 = vmax.f32 %v649_v60, 0.0 }
 0x150   : > { %v650_v61 = vpop.f32.mrf.mxu1 }
 0x151   : > { %v651_v62 = vadd.f32 %v1840_v46, %v650_v61 }
 0x153   : > { %v688_v0 = vmax.f32 %v651_v62, 0.0 }
 0x155   : > { %v703_v1 = vpack.c.bf16 %v688_v0, %v687_v63 }
 0x157   : > { %796 = vmatmul.bf16.gmra.mxu2 %v703_v1 }
 0x158   : > { %v653_v2 = vpop.f32.mrf.mxu1 }
 0x159   : > { %v654_v3 = vadd.f32 %v1840_v46, %v653_v2 }
 0x15b   : > { %v689_v6 = vmax.f32 %v654_v3, 0.0 }
 0x160   : > { %v655_v4 = vpop.f32.mrf.mxu1 }
 0x161   : > { %v656_v5 = vadd.f32 %v1840_v46, %v655_v4 }
 0x163   : > { %v690_v7 = vmax.f32 %v656_v5, 0.0 }
 0x165   : > { %v704_v8 = vpack.c.bf16 %v690_v7, %v689_v6 }
 0x167   : > { %801 = vmatmul.bf16.gmra.mxu2 %v704_v8 }
 0x168   : > { %v658_v9 = vpop.f32.mrf.mxu1 }
 0x169   : > { %v659_v10 = vadd.f32 %v1840_v46, %v658_v9 }
 0x16b   : > { %v691_v13 = vmax.f32 %v659_v10, 0.0 }
 0x170   : > { %v660_v11 = vpop.f32.mrf.mxu1 }
 0x171   : > { %v661_v12 = vadd.f32 %v1840_v46, %v660_v11 }
 0x173   : > { %v692_v14 = vmax.f32 %v661_v12, 0.0 }
 0x175   : > { %v705_v15 = vpack.c.bf16 %v692_v14, %v691_v13 }
 0x177   : > { %806 = vmatmul.bf16.gmra.mxu2 %v705_v15 }
 0x178   : > { %v663_v16 = vpop.f32.mrf.mxu1 }
 0x179   : > { %v664_v17 = vadd.f32 %v1840_v46, %v663_v16 }
 0x17b   : > { %v693_v20 = vmax.f32 %v664_v17, 0.0 }
 0x180   : > { %v665_v18 = vpop.f32.mrf.mxu1 }
 0x181   : > { %v666_v19 = vadd.f32 %v1840_v46, %v665_v18 }
 0x183   : > { %v694_v21 = vmax.f32 %v666_v19, 0.0 }
 0x185   : > { %v706_v22 = vpack.c.bf16 %v694_v21, %v693_v20 }
 0x187   : > { %811 = vmatmul.bf16.gmra.mxu2 %v706_v22 }
 0x188   : > { %v668_v23 = vpop.f32.mrf.mxu1 }
 0x189   : > { %v669_v26 = vadd.f32 %v1840_v46, %v668_v23 }
 0x18b   : > { %v695_v30 = vmax.f32 %v669_v26, 0.0 }
 0x190   : > { %v670_v27 = vpop.f32.mrf.mxu1 }
 0x191   : > { %v671_v29 = vadd.f32 %v1840_v46, %v670_v27 }
 0x193   : > { %v696_v31 = vmax.f32 %v671_v29, 0.0 }
 0x195   : > { %v707_v33 = vpack.c.bf16 %v696_v31, %v695_v30 }
 0x197   : > { %816 = vmatmul.bf16.gmra.mxu2 %v707_v33  ;;  %v1435_v33 = vld [vmem:[%s2043_s9 + $0x30] sm:$0xff] }
 0x198   : > { %v673_v35 = vpop.f32.mrf.mxu1  ;;  %1077 = vmatpush.bf16.msrb.mxu0 %v1435_v33 }
 0x199   : > { %v674_v39 = vadd.f32 %v1840_v46, %v673_v35 }
 0x19b   : > { %v697_v42 = vmax.f32 %v674_v39, 0.0 }
 0x19c   : > { %1078 = vmatpush.bf16.msrb.mxu0 %v1434_v36 }
 0x1a0   : > { %v675_v40 = vpop.f32.mrf.mxu1 }
 0x1a1   : > { %v676_v41 = vadd.f32 %v1840_v46, %v675_v40 }
 0x1a3   : > { %v698_v43 = vmax.f32 %v676_v41, 0.0  ;;  %v1433_v41 = vld [vmem:[%s2043_s9 + $0x20] sm:$0xff] }
 0x1a4   : > { %1079 = vmatpush.bf16.msrb.mxu0 %v1433_v41 }
 0x1a5   : > { %v708_v45 = vpack.c.bf16 %v698_v43, %v697_v42  ;;  %v1432_v43 = vld [vmem:[%s2043_s9 + $0x18] sm:$0xff] }
 0x1a7   : > { %821 = vmatmul.bf16.gmra.mxu2 %v708_v45  ;;  %v1431_v45 = vld [vmem:[%s2043_s9 + $0x10] sm:$0xff] }
 0x1a8   : > { %v678_v47 = vpop.f32.mrf.mxu1  ;;  %1080 = vmatpush.bf16.msrb.mxu0 %v1432_v43 }
 0x1a9   : > { %v679_v48 = vadd.f32 %v1840_v46, %v678_v47  ;;  %v1430_v47 = vld [vmem:[%s2043_s9 + $0x8] sm:$0xff] }
 0x1ab   : > { %v699_v51 = vmax.f32 %v679_v48, 0.0 }
 0x1ac   : > { %1081 = vmatpush.bf16.msrb.mxu0 %v1431_v45 }
 0x1b0   : > { %v680_v49 = vpop.f32.mrf.mxu1  ;;  %1082 = vmatpush.bf16.msrb.mxu0 %v1430_v47 }
 0x1b1   : > { %v681_v50 = vadd.f32 %v1840_v46, %v680_v49 }
 0x1b3   : > { %v700_v52 = vmax.f32 %v681_v50, 0.0 }
 0x1b5   : > { %v709_v37 = vpack.c.bf16 %v700_v52, %v699_v51 }
 0x1b7   : > { %826 = vmatmul.bf16.gmra.mxu2 %v709_v37  ;;  %v1429_v37 = vld [vmem:[%s2043_s9] sm:$0xff] }
 0x1b8   : > { %1083 = vmatpush.bf16.msrb.mxu0 %v1429_v37 }
 0x1ba   : > { %v787_v53 = vpop.f32.mrf.mxu2 }
 0x1bb   : > { %v788_v55 = vadd.f32 %v1887_v54, %v787_v53 }
 0x1bd   : > { %v832_v58 = vmax.f32 %v788_v55, 0.0 }
 0x1c2   : > { %v789_v56 = vpop.f32.mrf.mxu2 }
 0x1c3   : > { %v790_v57 = vadd.f32 %v1887_v54, %v789_v56 }
 0x1c5   : > { %v833_v59 = vmax.f32 %v790_v57, 0.0 }
 0x1c7   : > { %v850_v60 = vpack.c.bf16 %v833_v59, %v832_v58 }
 0x1c9   : > { %935 = vmatmul.bf16.vlgmr.msrb.gmra.mxu3 %v850_v60 }
 0x1ca   : > { %v792_v46 = vpop.f32.mrf.mxu2 }
 0x1cb   : > { %v793_v61 = vadd.f32 %v1887_v54, %v792_v46 }
 0x1cd   : > { %v834_v0 = vmax.f32 %v793_v61, 0.0 }
 0x1d2   : > { %v794_v62 = vpop.f32.mrf.mxu2 }
 0x1d3   : > { %v795_v63 = vadd.f32 %v1887_v54, %v794_v62  ;;  %v1934_v62 = vld [vmem:[%s2042_s8] ss:$0 sm:$0xff] }
 0x1d5   : > { %v835_v1 = vmax.f32 %v795_v63, 0.0 }
 0x1d7   : > { %v851_v2 = vpack.c.bf16 %v835_v1, %v834_v0 }
 0x1d9   : > { %940 = vmatmul.bf16.gmra.mxu3 %v851_v2 }
 0x1da   : > { %v797_v3 = vpop.f32.mrf.mxu2 }
 0x1db   : > { %v798_v4 = vadd.f32 %v1887_v54, %v797_v3 }
 0x1dd   : > { %v836_v7 = vmax.f32 %v798_v4, 0.0 }
 0x1e2   : > { %v799_v5 = vpop.f32.mrf.mxu2 }
 0x1e3   : > { %v800_v6 = vadd.f32 %v1887_v54, %v799_v5 }
 0x1e5   : > { %v837_v8 = vmax.f32 %v800_v6, 0.0 }
 0x1e7   : > { %v852_v9 = vpack.c.bf16 %v837_v8, %v836_v7 }
 0x1e9   : > { %945 = vmatmul.bf16.gmra.mxu3 %v852_v9 }
 0x1ea   : > { %v802_v10 = vpop.f32.mrf.mxu2 }
 0x1eb   : > { %v803_v11 = vadd.f32 %v1887_v54, %v802_v10 }
 0x1ed   : > { %v838_v14 = vmax.f32 %v803_v11, 0.0 }
 0x1f2   : > { %v804_v12 = vpop.f32.mrf.mxu2 }
 0x1f3   : > { %v805_v13 = vadd.f32 %v1887_v54, %v804_v12 }
 0x1f5   : > { %v839_v15 = vmax.f32 %v805_v13, 0.0 }
 0x1f7   : > { %v853_v16 = vpack.c.bf16 %v839_v15, %v838_v14 }
 0x1f9   : > { %950 = vmatmul.bf16.gmra.mxu3 %v853_v16 }
 0x1fa   : > { %v807_v17 = vpop.f32.mrf.mxu2 }
 0x1fb   : > { %v808_v18 = vadd.f32 %v1887_v54, %v807_v17 }
 0x1fd   : > { %v840_v21 = vmax.f32 %v808_v18, 0.0 }
 0x202   : > { %v809_v19 = vpop.f32.mrf.mxu2 }
 0x203   : > { %v810_v20 = vadd.f32 %v1887_v54, %v809_v19 }
 0x205   : > { %v841_v22 = vmax.f32 %v810_v20, 0.0 }
 0x207   : > { %v854_v23 = vpack.c.bf16 %v841_v22, %v840_v21 }
 0x209   : > { %955 = vmatmul.bf16.gmra.mxu3 %v854_v23 }
 0x20a   : > { %v812_v24 = vpop.f32.mrf.mxu2 }
 0x20b   : > { %v813_v25 = vadd.f32 %v1887_v54, %v812_v24 }
 0x20d   : > { %v842_v28 = vmax.f32 %v813_v25, 0.0 }
 0x212   : > { %v814_v26 = vpop.f32.mrf.mxu2 }
 0x213   : > { %v815_v27 = vadd.f32 %v1887_v54, %v814_v26 }
 0x215   : > { %v843_v29 = vmax.f32 %v815_v27, 0.0 }
 0x217   : > { %v855_v30 = vpack.c.bf16 %v843_v29, %v842_v28 }
 0x219   : > { %960 = vmatmul.bf16.gmra.mxu3 %v855_v30 }
 0x21a   : > { %v817_v31 = vpop.f32.mrf.mxu2 }
 0x21b   : > { %v818_v34 = vadd.f32 %v1887_v54, %v817_v31 }
 0x21d   : > { %v844_v39 = vmax.f32 %v818_v34, 0.0 }
 0x222   : > { %v819_v35 = vpop.f32.mrf.mxu2 }
 0x223   : > { %v820_v38 = vadd.f32 %v1887_v54, %v819_v35 }
 0x225   : > { %v845_v40 = vmax.f32 %v820_v38, 0.0 }
 0x227   : > { %v856_v42 = vpack.c.bf16 %v845_v40, %v844_v39 }
 0x229   : > { %965 = vmatmul.bf16.gmra.mxu3 %v856_v42 }
 0x22a   : > { %v822_v44 = vpop.f32.mrf.mxu2 }
 0x22b   : > { %v823_v48 = vadd.f32 %v1887_v54, %v822_v44 }
 0x22d   : > { %v846_v51 = vmax.f32 %v823_v48, 0.0 }
 0x232   : > { %v824_v49 = vpop.f32.mrf.mxu2 }
 0x233   : > { %v825_v50 = vadd.f32 %v1887_v54, %v824_v49 }
 0x235   : > { %v847_v52 = vmax.f32 %v825_v50, 0.0 }
 0x237   : > { %v857_v53 = vpack.c.bf16 %v847_v52, %v846_v51 }
 0x239   : > { %970 = vmatmul.bf16.gmra.mxu3 %v857_v53 }
 0x23a   : > { %v827_v55 = vpop.f32.mrf.mxu2 }
 0x23b   : > { %v828_v56 = vadd.f32 %v1887_v54, %v827_v55 }
 0x23d   : > { %v848_v59 = vmax.f32 %v828_v56, 0.0 }
 0x242   : > { %v829_v57 = vpop.f32.mrf.mxu2 }
 0x243   : > { %v830_v58 = vadd.f32 %v1887_v54, %v829_v57 }
 0x245   : > { %v849_v60 = vmax.f32 %v830_v58, 0.0 }
 0x247   : > { %v858_v46 = vpack.c.bf16 %v849_v60, %v848_v59 }
 0x249   : > { %975 = vmatmul.bf16.gmra.mxu3 %v858_v46 }
 0x24c   : > { %v936_v61 = vpop.f32.mrf.mxu3 }
 0x24d   : > { %v937_v63 = vadd.f32 %v1934_v62, %v936_v61 }
 0x24f   : > { %v981_v2 = vmax.f32 %v937_v63, 0.0  ;;  %v1539_v63 = vld [vmem:[%s2044_s10] ss:$0 sm:$0xff] }
 0x254   : > { %v938_v0 = vpop.f32.mrf.mxu3 }
 0x255   : > { %v939_v1 = vadd.f32 %v1934_v62, %v938_v0 }
 0x257   : > { %v982_v3 = vmax.f32 %v939_v1, 0.0 }
 0x259   : > { %v999_v4 = vpack.c.bf16 %v982_v3, %v981_v2 }
 0x25b   : > { %1084 = vmatmul.bf16.vlgmr.msrb.gmra.mxu0 %v999_v4 }
 0x25c   : > { %v941_v54 = vpop.f32.mrf.mxu3 }
 0x25d   : > { %v942_v5 = vadd.f32 %v1934_v62, %v941_v54 }
 0x25f   : > { %v983_v8 = vmax.f32 %v942_v5, 0.0 }
 0x264   : > { %v943_v6 = vpop.f32.mrf.mxu3 }
 0x265   : > { %v944_v7 = vadd.f32 %v1934_v62, %v943_v6 }
 0x267   : > { %v984_v9 = vmax.f32 %v944_v7, 0.0 }
 0x269   : > { %v1000_v10 = vpack.c.bf16 %v984_v9, %v983_v8 }
 0x26b   : > { %1089 = vmatmul.bf16.gmra.mxu0 %v1000_v10 }
 0x26c   : > { %v946_v11 = vpop.f32.mrf.mxu3 }
 0x26d   : > { %v947_v12 = vadd.f32 %v1934_v62, %v946_v11 }
 0x26f   : > { %v985_v15 = vmax.f32 %v947_v12, 0.0 }
 0x274   : > { %v948_v13 = vpop.f32.mrf.mxu3 }
 0x275   : > { %v949_v14 = vadd.f32 %v1934_v62, %v948_v13 }
 0x277   : > { %v986_v16 = vmax.f32 %v949_v14, 0.0 }
 0x279   : > { %v1001_v17 = vpack.c.bf16 %v986_v16, %v985_v15 }
 0x27b   : > { %1094 = vmatmul.bf16.gmra.mxu0 %v1001_v17 }
 0x27c   : > { %v951_v18 = vpop.f32.mrf.mxu3 }
 0x27d   : > { %v952_v19 = vadd.f32 %v1934_v62, %v951_v18 }
 0x27f   : > { %v987_v22 = vmax.f32 %v952_v19, 0.0 }
 0x284   : > { %v953_v20 = vpop.f32.mrf.mxu3 }
 0x285   : > { %v954_v21 = vadd.f32 %v1934_v62, %v953_v20 }
 0x287   : > { %v988_v23 = vmax.f32 %v954_v21, 0.0 }
 0x289   : > { %v1002_v24 = vpack.c.bf16 %v988_v23, %v987_v22 }
 0x28b   : > { %1099 = vmatmul.bf16.gmra.mxu0 %v1002_v24 }
 0x28c   : > { %v956_v25 = vpop.f32.mrf.mxu3 }
 0x28d   : > { %v957_v26 = vadd.f32 %v1934_v62, %v956_v25 }
 0x28f   : > { %v989_v29 = vmax.f32 %v957_v26, 0.0 }
 0x294   : > { %v958_v27 = vpop.f32.mrf.mxu3 }
 0x295   : > { %v959_v28 = vadd.f32 %v1934_v62, %v958_v27 }
 0x297   : > { %v990_v30 = vmax.f32 %v959_v28, 0.0 }
 0x299   : > { %v1003_v31 = vpack.c.bf16 %v990_v30, %v989_v29 }
 0x29b   : > { %1104 = vmatmul.bf16.gmra.mxu0 %v1003_v31 }
 0x29c   : > { %v961_v32 = vpop.f32.mrf.mxu3 }
 0x29d   : > { %v962_v33 = vadd.f32 %v1934_v62, %v961_v32 }
 0x29f   : > { %v991_v36 = vmax.f32 %v962_v33, 0.0 }
 0x2a4   : > { %v963_v34 = vpop.f32.mrf.mxu3 }
 0x2a5   : > { %v964_v35 = vadd.f32 %v1934_v62, %v963_v34 }
 0x2a7   : > { %v992_v38 = vmax.f32 %v964_v35, 0.0 }
 0x2a9   : > { %v1004_v39 = vpack.c.bf16 %v992_v38, %v991_v36 }
 0x2ab   : > { %1109 = vmatmul.bf16.gmra.mxu0 %v1004_v39 }
 0x2ac   : > { %v966_v40 = vpop.f32.mrf.mxu3 }
 0x2ad   : > { %v967_v41 = vadd.f32 %v1934_v62, %v966_v40 }
 0x2af   : > { %v993_v44 = vmax.f32 %v967_v41, 0.0 }
 0x2b4   : > { %v968_v42 = vpop.f32.mrf.mxu3 }
 0x2b5   : > { %v969_v43 = vadd.f32 %v1934_v62, %v968_v42 }
 0x2b7   : > { %v994_v45 = vmax.f32 %v969_v43, 0.0 }
 0x2b9   : > { %v1005_v47 = vpack.c.bf16 %v994_v45, %v993_v44 }
 0x2bb   : > { %1114 = vmatmul.bf16.gmra.mxu0 %v1005_v47 }
 0x2bc   : > { %v971_v48 = vpop.f32.mrf.mxu3 }
 0x2bd   : > { %v972_v49 = vadd.f32 %v1934_v62, %v971_v48 }
 0x2bf   : > { %v995_v52 = vmax.f32 %v972_v49, 0.0 }
 0x2c4   : > { %v973_v50 = vpop.f32.mrf.mxu3 }
 0x2c5   : > { %v974_v51 = vadd.f32 %v1934_v62, %v973_v50 }
 0x2c7   : > { %v996_v37 = vmax.f32 %v974_v51, 0.0 }
 0x2c9   : > { %v1006_v53 = vpack.c.bf16 %v996_v37, %v995_v52 }
 0x2cb   : > { %1119 = vmatmul.bf16.gmra.mxu0 %v1006_v53 }
 0x2cc   : > { %v976_v55 = vpop.f32.mrf.mxu3 }
 0x2cd   : > { %v977_v56 = vadd.f32 %v1934_v62, %v976_v55 }
 0x2cf   : > { %v997_v59 = vmax.f32 %v977_v56, 0.0 }
 0x2d4   : > { %v978_v57 = vpop.f32.mrf.mxu3 }
 0x2d5   : > { %v979_v58 = vadd.f32 %v1934_v62, %v978_v57 }
 0x2d7   : > { %v998_v60 = vmax.f32 %v979_v58, 0.0 }
 0x2d8   : > { %v1085_v46 = vpop.f32.mrf.mxu0 }
 0x2d9   : > { %v1007_v61 = vpack.c.bf16 %v998_v60, %v997_v59  ;;  %v1086_v1 = vadd.f32 %v1539_v63, %v1085_v46 }
 0x2db   : > { %1124 = vmatmul.bf16.gmra.mxu0 %v1007_v61 }
 0x2e0   : > { %v1087_v0 = vpop.f32.mrf.mxu0 }
 0x2e1   : > { %v1088_v2 = vadd.f32 %v1539_v63, %v1087_v0 }
 0x2e3   : > { %v1441_v3 = vpack.c.bf16 %v1088_v2, %v1086_v1 }
 0x2e5   : > { %1442 = vst [vmem:[%s1960_s14] sm:$0xff] %v1441_v3  }
 0x2e8   : > { %v1090_v62 = vpop.f32.mrf.mxu0 }
 0x2e9   : > { %v1091_v54 = vadd.f32 %v1539_v63, %v1090_v62 }
 0x2f0   : > { %v1092_v4 = vpop.f32.mrf.mxu0 }
 0x2f1   : > { %v1093_v5 = vadd.f32 %v1539_v63, %v1092_v4 }
 0x2f3   : > { %v1446_v6 = vpack.c.bf16 %v1093_v5, %v1091_v54 }
 0x2f5   : > { %1483 = vst [vmem:[%s1960_s14 + $0x8] sm:$0xff] %v1446_v6  }
 0x2f8   : > { %v1095_v7 = vpop.f32.mrf.mxu0 }
 0x2f9   : > { %v1096_v9 = vadd.f32 %v1539_v63, %v1095_v7 }
 0x300   : > { %v1097_v8 = vpop.f32.mrf.mxu0 }
 0x301   : > { %v1098_v10 = vadd.f32 %v1539_v63, %v1097_v8 }
 0x303   : > { %v1451_v11 = vpack.c.bf16 %v1098_v10, %v1096_v9 }
 0x305   : > { %1484 = vst [vmem:[%s1960_s14 + $0x10] sm:$0xff] %v1451_v11  }
 0x308   : > { %v1100_v12 = vpop.f32.mrf.mxu0 }
 0x309   : > { %v1101_v14 = vadd.f32 %v1539_v63, %v1100_v12 }
 0x310   : > { %v1102_v13 = vpop.f32.mrf.mxu0 }
 0x311   : > { %v1103_v15 = vadd.f32 %v1539_v63, %v1102_v13 }
 0x313   : > { %v1456_v16 = vpack.c.bf16 %v1103_v15, %v1101_v14 }
 0x315   : > { %1485 = vst [vmem:[%s1960_s14 + $0x18] sm:$0xff] %v1456_v16  }
 0x318   : > { %v1105_v17 = vpop.f32.mrf.mxu0 }
 0x319   : > { %v1106_v19 = vadd.f32 %v1539_v63, %v1105_v17 }
 0x320   : > { %v1107_v18 = vpop.f32.mrf.mxu0 }
 0x321   : > { %v1108_v20 = vadd.f32 %v1539_v63, %v1107_v18 }
 0x323   : > { %v1461_v21 = vpack.c.bf16 %v1108_v20, %v1106_v19 }
 0x325   : > { %1486 = vst [vmem:[%s1960_s14 + $0x20] sm:$0xff] %v1461_v21  }
 0x328   : > { %v1110_v22 = vpop.f32.mrf.mxu0 }
 0x329   : > { %v1111_v24 = vadd.f32 %v1539_v63, %v1110_v22 }
 0x330   : > { %v1112_v23 = vpop.f32.mrf.mxu0 }
 0x331   : > { %v1113_v25 = vadd.f32 %v1539_v63, %v1112_v23 }
 0x333   : > { %v1466_v26 = vpack.c.bf16 %v1113_v25, %v1111_v24 }
 0x335   : > { %1487 = vst [vmem:[%s1960_s14 + $0x28] sm:$0xff] %v1466_v26  }
 0x338   : > { %v1115_v27 = vpop.f32.mrf.mxu0 }
 0x339   : > { %v1116_v29 = vadd.f32 %v1539_v63, %v1115_v27 }
 0x340   : > { %v1117_v28 = vpop.f32.mrf.mxu0 }
 0x341   : > { %v1118_v30 = vadd.f32 %v1539_v63, %v1117_v28 }
 0x343   : > { %v1471_v31 = vpack.c.bf16 %v1118_v30, %v1116_v29 }
 0x345   : > { %1488 = vst [vmem:[%s1960_s14 + $0x30] sm:$0xff] %v1471_v31  }
 0x348   : > { %v1120_v32 = vpop.f32.mrf.mxu0 }
 0x349   : > { %v1121_v34 = vadd.f32 %v1539_v63, %v1120_v32 }
 0x350   : > { %v1122_v33 = vpop.f32.mrf.mxu0 }
 0x351   : > { %v1123_v35 = vadd.f32 %v1539_v63, %v1122_v33 }
 0x353   : > { %v1476_v36 = vpack.c.bf16 %v1123_v35, %v1121_v34 }
 0x355   : > { %1489 = vst [vmem:[%s1960_s14 + $0x38] sm:$0xff] %v1476_v36  }
 0x358   : > { %v1125_v38 = vpop.f32.mrf.mxu0 }
 0x359   : > { %v1126_v40 = vadd.f32 %v1539_v63, %v1125_v38 }
 0x360   : > { %v1127_v39 = vpop.f32.mrf.mxu0 }
 0x361   : > { %v1128_v41 = vadd.f32 %v1539_v63, %v1127_v39  ;;  %1173 = sbr.rel (!%p1716_p5) target bundleno = 902 (0x386), region = 68 }
 0x363   : > { %v1481_v42 = vpack.c.bf16 %v1128_v41, %v1126_v40 }
 0x365   : > { %1490 = vst [vmem:[%s1960_s14 + $0x40] sm:$0xff] %v1481_v42  }
 0x366   : > { %s2064_s16 = smov (!%p1176_p11, %s1175_s16), 18 }
 0x367   : > { %s1397_s22 = sshll.u32 %s2064_s16, 2 }
 0x368   : > { %s1179_s24 = ssub.s32 72, %s1397_s22 }
 0x369   : > { %s1180_s29 = sshll.u32 %s1179_s24, 4 }
 0x36a   : > { %1181 = vsyncadd %s1973_s15, %s1180_s29  ;;  %p1982_p12 = scmp.ne.s32.totalorder %s1397_s22, 0  ;;  %s1437_s27 = smul.u32 72, %s1699_s21 }
 0x36b   : > { %s1186_s30 = sshll.u32 %s1960_s14, 4  ;;  %s2046_s12 = sshll.u32 %s2064_s16, 6  ;;  %s1992_s30 = int_to_ptr.vmem [resolvable:$true] %s1186_s30 }
 0x36c   : > { %s1184_s1 = scalar_lea.hbm %s2045_s11, %s1437_s27  ;;  %s1540_s29 = sshra.s32 %s1992_s30, 4  ;;  %s1541_s29 = int_to_ptr.vmem [resolvable:$true] %s1540_s29 }
 0x36d   : > { %s1188_s24 = sshll.u32 %s1184_s1, 4  ;;  %s1542_s22 = sshrl.u32 %s2046_s12, 4  ;;  %s1994_s24 = int_to_ptr.hbm [resolvable:$true] %s1188_s24 }
 0x36e   : > { %s1547_s2 = scalar_lea.vmem %s1541_s29, %s1542_s22  ;;  %s1615_s21 = smov [#allocation2]  }
 0x36f   : > { %p1548_p13 = scmp.ne.s32.totalorder %s1541_s29, %s1547_s2  ;;  %s1551_s14 = scalar_lea.vmem %s1615_s21, 144 }
 0x370   : > { %p1553_p2 = scmp.lt.s32.totalorder %s1551_s14, %s1547_s2 }
 0x371   : > { %p1549_p0 = pnand %p1548_p13, %p1982_p12 }
 0x373   : > { %p1550_p1 = pneg %p1549_p0 }
 0x375   : > { %p1555_p3 = pnand %p1553_p2, %p1550_p1 }
 0x377   : > { %1558 = shalt.err (!%p1555_p3)
}
 0x378   : > { %s1559_s0 = sshra.s32 %s1994_s24, 4  ;;  %s1570_s29 = scalar_lea.hbm %s2045_s11, 136  ;;  %s1560_s0 = int_to_ptr.hbm [resolvable:$true] %s1559_s0 }
 0x379   : > { %s1566_s1 = scalar_lea.hbm %s1560_s0, %s1542_s22  ;;  %p1571_p8 = scmp.lt.s32.totalorder %s1560_s0, %s2045_s11 }
 0x37a   : > { %p1567_p4 = scmp.ne.s32.totalorder %s1560_s0, %s1566_s1  ;;  %p1572_p9 = scmp.lt.s32.totalorder %s1570_s29, %s1566_s1 }
 0x37c   : > { %p1568_p5 = pnand %p1567_p4, %p1982_p12  ;;  %p1573_p10 = por %p1572_p9, %p1571_p8 }
 0x37e   : > { %p1569_p7 = pneg %p1568_p5 }
 0x380   : > { %p1574_p11 = pnand %p1573_p10, %p1569_p7 }
 0x382   : > { %1577 = shalt.err (!%p1574_p11)
}
 0x383   : > { %s1616_s2 = smov 64   ;;  %s1617_s22 = smov 4  }
 0x384   : > { %s2058_s21 = sshll.u32 %s2064_s16, 6 }
 0x385   : > { %1194 = dma.vmem_to_hbm [thread:$0]  (%p1982_p12), %s1992_s30, %s2058_s21, %s1994_s24, %s1973_s15, %s1616_s2, %s1616_s2, %s1617_s22  }
 0x386 PF: > { %p1500_p13 = scmp.ge.s32.totalorder %s1613_s20, 2  ;;  %s1203_s3 = sand.u32 1, %s1601_s17  }
 0x387   : > { %s1204_s12 = scalar_lea.sflag [#allocation3], %s1203_s3 }
 0x388   : > { %p1497_p0 = pnand %p1500_p13, %p1720_p6 }
 0x38a   : > { %p1498_p1 = pneg %p1497_p0 }
 0x38c   : > { %1596 = dma.done.wait (%p1498_p1), %s1204_s12, 1152  }
 0x38d   : > { %1598 = vsyncadd (%p1498_p1), %s1204_s12, 4294966144  ;;  %p21_p2 = scmp.ge.s32.totalorder %s1703_s23, 4   ;;  %s2059_s17 = smov %s1605_s18 }
 0x38e   : > { %s2060_s18 = smov %s1609_s19  ;;  %s2061_s19 = smov %s1714_s26 }
 0x38f   : > { %s2062_s20 = smov %s1703_s23  ;;  %23 = sbr.rel (!%p21_p2) target bundleno = 8 (0x8), region = 99 }
 0x394   :  { %1210 = vsyncpa [#allocation3], 1 }
 0x395   :  { %1212 = vsyncpa [#allocation3 + $0x1], 1 }

</bundles_post_ra>
